<compile_context>
chip_gen: v7x
topology: tpu7x:2x2x1
jax: 0.10.0
libtpu: 0.0.40
codegen_flags: <defaults>
</compile_context>

<pallas_src>
import jax
import jax.numpy as jnp
from jax.experimental import pallas as pl
from jax.experimental.pallas import tpu as pltpu

NUM_CLASSES = 17     # c in My_Model.__init__
OP_F = 96            # op_f: channels out of mobilenet_v3_small features[:-1]
PAD_CLASSES = 128    # lane-dense class axis (17 padded to one full 128-lane vreg)
NEG_PAD_BIAS = -1e30


def _round_up(x, m):
    return ((x + m - 1) // m) * m


def head_kernel(x_ref, w_ref, b_ref, o_ref):
    """x_ref: (tile_b, C, HW) native-NCHW features (spatial flattened onto lanes);
    w_ref: (C, PAD_CLASSES) padded W^T; b_ref: (1, PAD_CLASSES) padded bias
    (-1e30 on pad lanes); o_ref: (tile_b, PAD_CLASSES) softmax probabilities."""
    x = x_ref[...].astype(jnp.float32)
    hw = x.shape[-1]

    # AdaptiveAvgPool2d(1) + x.view(B, -1): mean over spatial positions.
    pooled = jnp.sum(x, axis=-1) * (1.0 / hw)                       # (tile_b, C)

    # nn.Dropout(0.1) is the identity at inference time (eval mode).

    # Linear(96 -> 17), padded to 128 output lanes.  Padded columns get bias
    # -1e30 so they contribute ~0 after softmax.
    logits = jnp.dot(pooled, w_ref[...],
                     preferred_element_type=jnp.float32) + b_ref[...]   # (tile_b, 128)

    # Softmax over the class axis (dim=1 in PyTorch), numerically stabilized.
    m = jnp.max(logits, axis=-1, keepdims=True)
    e = jnp.exp(logits - m)
    o_ref[...] = (e / jnp.sum(e, axis=-1, keepdims=True)).astype(o_ref.dtype)


def my_model_head(feats_nchw, weight, bias, *, max_tile_bytes=8 << 20):
    """feats_nchw: (B, 96, H, W) backbone features in native NCHW / native dtype.
    weight: (NUM_CLASSES, 96) — PyTorch nn.Linear layout.  bias: (NUM_CLASSES,)."""
    B, C, H, W = feats_nchw.shape
    assert C == OP_F
    HW = H * W

    # Free reshape only (no transpose, no HBM copy): (B, C, H, W) -> (B, C, H*W).
    x = feats_nchw.reshape(B, C, HW)

    # Batch tile sized so one (double-buffered) input tile stays well inside
    # scoped VMEM on every TPU generation (v7x has only 64 MiB physical).
    itemsize = jnp.dtype(x.dtype).itemsize
    bytes_per_row = max(C * HW * itemsize, 1)
    tile_b = max(8, min(512, (max_tile_bytes // bytes_per_row) // 8 * 8))
    tile_b = min(tile_b, _round_up(B, 8))
    B_pad = _round_up(B, tile_b)
    if B_pad != B:
        x = jnp.pad(x, ((0, B_pad - B), (0, 0), (0, 0)))

    # Lane-dense linear params: W^T zero-padded to (96, 128); pad bias = -1e30.
    wt = jnp.zeros((C, PAD_CLASSES), jnp.float32).at[:, :NUM_CLASSES].set(
        weight.T.astype(jnp.float32))
    b2 = jnp.full((1, PAD_CLASSES), NEG_PAD_BIAS, jnp.float32).at[:, :NUM_CLASSES].set(
        bias.astype(jnp.float32))

    cost = pl.CostEstimate(
        flops=2 * B_pad * C * PAD_CLASSES,
        transcendentals=B_pad * PAD_CLASSES,
        bytes_accessed=(B_pad * C * HW * itemsize            # feature stream (dominant)
                        + C * PAD_CLASSES * 4 + PAD_CLASSES * 4
                        + B_pad * PAD_CLASSES * 4),
    )

    out = pl.pallas_call(
        head_kernel,
        out_shape=jax.ShapeDtypeStruct((B_pad, PAD_CLASSES), jnp.float32),
        grid_spec=pl.GridSpec(
            grid=(B_pad // tile_b,),
            in_specs=[
                pl.BlockSpec((tile_b, C, HW), lambda i: (i, 0, 0)),
                pl.BlockSpec((C, PAD_CLASSES), lambda i: (0, 0)),
                pl.BlockSpec((1, PAD_CLASSES), lambda i: (0, 0)),
            ],
            out_specs=pl.BlockSpec((tile_b, PAD_CLASSES), lambda i: (i, 0)),
        ),
        compiler_params=pltpu.CompilerParams(
            dimension_semantics=("parallel",),
        ),
        cost_estimate=cost,
    )(x, wt, b2)

    # Strip batch padding and the padded class lanes.
    return out[:B, :NUM_CLASSES]


if __name__ == "__main__":
    key = jax.random.PRNGKey(0)
    k_feat, k_w, k_b = jax.random.split(key, 3)

    # Small, deterministic synthetic inputs (backbone feature map + Linear params).
    B, H, W = 2, 8, 8
    feats = jax.random.normal(k_feat, (B, OP_F, H, W), dtype=jnp.float32)

    # Deterministic synthetic Linear(96, 17) parameters (PyTorch layout: (out, in)).
    weight = 0.05 * jax.random.normal(k_w, (NUM_CLASSES, OP_F), dtype=jnp.float32)
    bias = 0.01 * jax.random.normal(k_b, (NUM_CLASSES,), dtype=jnp.float32)

    out = my_model_head(feats, weight, bias)
    out = jax.block_until_ready(out)

    # Pure-JAX reference of the same head for a sanity check.
    pooled_ref = jnp.mean(feats, axis=(2, 3))                      # (B, 96)
    logits_ref = pooled_ref @ weight.T + bias                      # (B, 17)
    ref = jax.nn.softmax(logits_ref, axis=1)
    assert out.shape == (B, NUM_CLASSES)
    assert jnp.allclose(out, ref, atol=1e-5, rtol=1e-5)
    assert jnp.allclose(jnp.sum(out, axis=1), 1.0, atol=1e-5)

    print("KERNEL_OK")
</pallas_src>

<mosaic_0001>
module attributes {stable_mosaic.version = 11 : i64} {
  func.func @head_kernel(%arg0: i32, %arg1: memref<8x96x64xf32, #tpu.memory_space<vmem>>, %arg2: memref<96x128xf32, #tpu.memory_space<vmem>>, %arg3: memref<1x128xf32, #tpu.memory_space<vmem>>, %arg4: memref<8x128xf32, #tpu.memory_space<vmem>>) attributes {dimension_semantics = [#tpu.dimension_semantics<parallel>], iteration_bounds = array<i64: 1>, scalar_prefetch = 0 : i64, scratch_operands = 0 : i64, tpu.core_type = #tpu.core_type<tc>, window_params = [{transform_indices = @transform_0, window_bounds = array<i64: 8, 96, 64>}, {pipeline_mode = #tpu.pipeline_mode<synchronous>, transform_indices = @transform_1, window_bounds = array<i64: 96, 128>}, {pipeline_mode = #tpu.pipeline_mode<synchronous>, transform_indices = @transform_2, window_bounds = array<i64: 1, 128>}, {transform_indices = @transform_3, window_bounds = array<i64: 8, 128>}]} {
    %c0 = arith.constant 0 : index
    %c0_0 = arith.constant 0 : index
    %c0_1 = arith.constant 0 : index
    %0 = vector.load %arg1[%c0, %c0_0, %c0_1] : memref<8x96x64xf32, #tpu.memory_space<vmem>>, vector<8x96x64xf32>
    %cst = arith.constant dense<0.000000e+00> : vector<8x96xf32>
    %1 = vector.multi_reduction <add>, %0, %cst [2] : vector<8x96x64xf32> to vector<8x96xf32>
    %cst_2 = arith.constant 1.562500e-02 : f32
    %2 = vector.broadcast %cst_2 : f32 to vector<8x96xf32>
    %3 = arith.mulf %1, %2 : vector<8x96xf32>
    %c0_3 = arith.constant 0 : index
    %c0_4 = arith.constant 0 : index
    %4 = vector.load %arg2[%c0_3, %c0_4] : memref<96x128xf32, #tpu.memory_space<vmem>>, vector<96x128xf32>
    %cst_5 = arith.constant dense<0.000000e+00> : vector<8x128xf32>
    %5 = tpu.matmul %3, %4, %cst_5 {dimension_numbers = #tpu.dot_dimension_numbers<[1], [0], [0], [1], [0, 0, 1, 1], [], []>} : vector<8x96xf32>, vector<96x128xf32>, vector<8x128xf32> -> vector<8x128xf32>
    %c0_6 = arith.constant 0 : index
    %c0_7 = arith.constant 0 : index
    %6 = vector.load %arg3[%c0_6, %c0_7] : memref<1x128xf32, #tpu.memory_space<vmem>>, vector<1x128xf32>
    %7 = vector.broadcast %6 : vector<1x128xf32> to vector<8x128xf32>
    %8 = arith.addf %5, %7 : vector<8x128xf32>
    %cst_8 = arith.constant dense<0xFF800000> : vector<8xf32>
    %9 = vector.multi_reduction <maximumf>, %8, %cst_8 [1] : vector<8x128xf32> to vector<8xf32>
    %10 = vector.shape_cast %9 : vector<8xf32> to vector<8x1xf32>
    %11 = vector.broadcast %10 : vector<8x1xf32> to vector<8x128xf32>
    %12 = arith.subf %8, %11 : vector<8x128xf32>
    %13 = math.exp %12 : vector<8x128xf32>
    %cst_9 = arith.constant dense<0.000000e+00> : vector<8xf32>
    %14 = vector.multi_reduction <add>, %13, %cst_9 [1] : vector<8x128xf32> to vector<8xf32>
    %15 = vector.shape_cast %14 : vector<8xf32> to vector<8x1xf32>
    %16 = vector.broadcast %15 : vector<8x1xf32> to vector<8x128xf32>
    %17 = arith.divf %13, %16 : vector<8x128xf32>
    %c0_10 = arith.constant 0 : index
    %c0_11 = arith.constant 0 : index
    %18 = vector.load %arg4[%c0_10, %c0_11] : memref<8x128xf32, #tpu.memory_space<vmem>>, vector<8x128xf32>
    tpu.vector_store %arg4[%c0_10, %c0_11], %17 {strides = array<i32>} : memref<8x128xf32, #tpu.memory_space<vmem>>, vector<8x128xf32>,
    return
  }
  func.func @transform_0(%arg0: i32) -> (i32, i32, i32) {
    %c0_i32 = arith.constant 0 : i32
    %c0_i32_0 = arith.constant 0 : i32
    %c0_i32_1 = arith.constant 0 : i32
    return %arg0, %c0_i32, %c0_i32_0 : i32, i32, i32
  }
  func.func @transform_1(%arg0: i32) -> (i32, i32) {
    %c0_i32 = arith.constant 0 : i32
    %c0_i32_0 = arith.constant 0 : i32
    %c0_i32_1 = arith.constant 0 : i32
    return %c0_i32, %c0_i32_0 : i32, i32
  }
  func.func @transform_2(%arg0: i32) -> (i32, i32) {
    %c0_i32 = arith.constant 0 : i32
    %c0_i32_0 = arith.constant 0 : i32
    %c0_i32_1 = arith.constant 0 : i32
    return %c0_i32, %c0_i32_0 : i32, i32
  }
  func.func @transform_3(%arg0: i32) -> (i32, i32) {
    %c0_i32 = arith.constant 0 : i32
    %c0_i32_0 = arith.constant 0 : i32
    return %arg0, %c0_i32 : i32, i32
  }
}

</mosaic_0001>

<bundles_post_ra>
// kernel: tpu_custom_call.1
= control target key start
LH: loop header
LB: loop body
LE: loop exit
PB: predicated region body
PF: predicated region fallthrough
CT: control target
= control target key end

     0   :  { %vm111_vm0 = vcmask 523264   ;;  %s2040_s0 = inlined_call_operand.vmem [shape: f32[8,96,64], index: 0, kind: input, shape index: {}]   ;;  %s2041_s1 = inlined_call_operand.vmem [shape: f32[96,128], index: 1, kind: input, shape index: {}]   ;;  %s2042_s2 = inlined_call_operand.vmem [shape: f32[1,128], index: 2, kind: input, shape index: {}]   ;;  %s2043_s3 = inlined_call_operand.hbm [shape: f32[8,128], index: 3, kind: output, shape index: {}]  }
   0x1   :  { %v27_v0 = vld [vmem:[%s2040_s0 + $0x60] sm:$0xff]  ;;  %v28_v2 = vld [vmem:[%s2040_s0 + $0x68] sm:$0xff]  ;;  %v29_v8 = vld [vmem:[%s2040_s0 + $0x70] sm:$0xff] }
   0x2   :  { %v15_v1 = vld [vmem:[%s2040_s0] sm:$0xff]  ;;  %v148_v3 = vsel %vm111_vm0, %v27_v0, 0.0  ;;  %v16_v5 = vld [vmem:[%s2040_s0 + $0x8] sm:$0xff]  ;;  %v151_v6 = vsel %vm111_vm0, %v28_v2, 0.0  ;;  %v17_v9 = vld [vmem:[%s2040_s0 + $0x10] sm:$0xff]  ;;  %v154_v10 = vsel %vm111_vm0, %v29_v8, 0.0 }
   0x3   :  { %v112_v4 = vsel %vm111_vm0, %v15_v1, 0.0  ;;  %149 = vadd.xlane.f32.xlu1 %v148_v3  ;;  %v115_v7 = vsel %vm111_vm0, %v16_v5, 0.0  ;;  %v118_v11 = vsel %vm111_vm0, %v17_v9, 0.0  ;;  %v40_v12 = vld [vmem:[%s2040_s0 + $0xc8] sm:$0xff]  ;;  %v39_v13 = vld [vmem:[%s2040_s0 + $0xc0] sm:$0xff]  ;;  %v30_v16 = vld [vmem:[%s2040_s0 + $0x78] sm:$0xff] }
   0x4   :  { %113 = vadd.xlane.f32.xlu0 %v112_v4  ;;  %v187_v14 = vsel %vm111_vm0, %v40_v12, 0.0  ;;  %v184_v15 = vsel %vm111_vm0, %v39_v13, 0.0  ;;  %v18_v17 = vld [vmem:[%s2040_s0 + $0x18] sm:$0xff]  ;;  %v157_v18 = vsel %vm111_vm0, %v30_v16, 0.0  ;;  %v51_v20 = vld [vmem:[%s2040_s0 + $0x120] sm:$0xff]  ;;  %v41_v21 = vld [vmem:[%s2040_s0 + $0xd0] sm:$0xff] }
   0x5   :  { %v121_v19 = vsel %vm111_vm0, %v18_v17, 0.0  ;;  %v220_v22 = vsel %vm111_vm0, %v51_v20, 0.0  ;;  %v190_v23 = vsel %vm111_vm0, %v41_v21, 0.0  ;;  %v19_v24 = vld [vmem:[%s2040_s0 + $0x20] sm:$0xff]  ;;  %v52_v25 = vld [vmem:[%s2040_s0 + $0x128] sm:$0xff]  ;;  %v42_v28 = vld [vmem:[%s2040_s0 + $0xd8] sm:$0xff] }
   0x6   :  { %v124_v26 = vsel %vm111_vm0, %v19_v24, 0.0  ;;  %v223_v27 = vsel %vm111_vm0, %v52_v25, 0.0  ;;  %v31_v29 = vld [vmem:[%s2040_s0 + $0x80] sm:$0xff]  ;;  %v193_v30 = vsel %vm111_vm0, %v42_v28, 0.0 }
   0x7   :  { %152 = vadd.xlane.f32.xlu1 %v151_v6  ;;  %v160_v31 = vsel %vm111_vm0, %v31_v29, 0.0 }
   0x8   :  { %116 = vadd.xlane.f32.xlu0 %v115_v7 }
   0xb   :  { %155 = vadd.xlane.f32.xlu1 %v154_v10 }
   0xc   :  { %119 = vadd.xlane.f32.xlu0 %v118_v11 }
   0xf   :  { %188 = vadd.xlane.f32.xlu1 %v187_v14 }
  0x10   :  { %185 = vadd.xlane.f32.xlu0 %v184_v15 }
  0x13   :  { %158 = vadd.xlane.f32.xlu1 %v157_v18 }
  0x14   :  { %122 = vadd.xlane.f32.xlu0 %v121_v19 }
  0x17   :  { %221 = vadd.xlane.f32.xlu1 %v220_v22 }
  0x18   :  { %191 = vadd.xlane.f32.xlu0 %v190_v23 }
  0x1b   :  { %125 = vadd.xlane.f32.xlu1 %v124_v26 }
  0x1c   :  { %224 = vadd.xlane.f32.xlu0 %v223_v27 }
  0x1d   :  { %8 = vsyncpa [#allocation3], 0  ;;  %v63_v32 = vld [vmem:[%s2040_s0 + $0x180] sm:$0xff]  ;;  %v53_v33 = vld [vmem:[%s2040_s0 + $0x130] sm:$0xff]  ;;  %vm622_vm1 = vcmask 130112   ;;  %vm629_vm2 = vcmask 195712  }
  0x1e   :  { %v256_v34 = vsel %vm111_vm0, %v63_v32, 0.0  ;;  %v226_v35 = vsel %vm111_vm0, %v53_v33, 0.0  ;;  %v20_v36 = vld [vmem:[%s2040_s0 + $0x28] sm:$0xff]  ;;  %v43_v40 = vld [vmem:[%s2040_s0 + $0xe0] sm:$0xff]  ;;  %v65_v44 = vld [vmem:[%s2040_s0 + $0x190] sm:$0xff]  ;;  %vm636_vm3 = vcmask 261312  }
  0x1f   :  { %194 = vadd.xlane.f32.xlu1 %v193_v30  ;;  %v64_v37 = vld [vmem:[%s2040_s0 + $0x188] sm:$0xff]  ;;  %v127_v38 = vsel %vm111_vm0, %v20_v36, 0.0  ;;  %v196_v42 = vsel %vm111_vm0, %v43_v40, 0.0  ;;  %v54_v45 = vld [vmem:[%s2040_s0 + $0x138] sm:$0xff]  ;;  %v262_v46 = vsel %vm111_vm0, %v65_v44, 0.0  ;;  %v75_v49 = vld [vmem:[%s2040_s0 + $0x1e0] sm:$0xff] }
  0x20   :  { %161 = vadd.xlane.f32.xlu0 %v160_v31  ;;  %v259_v39 = vsel %vm111_vm0, %v64_v37, 0.0  ;;  %v32_v41 = vld [vmem:[%s2040_s0 + $0x88] sm:$0xff]  ;;  %v229_v47 = vsel %vm111_vm0, %v54_v45, 0.0  ;;  %v292_v51 = vsel %vm111_vm0, %v75_v49, 0.0  ;;  %v33_v52 = vld [vmem:[%s2040_s0 + $0x90] sm:$0xff]  ;;  %v55_v56 = vld [vmem:[%s2040_s0 + $0x140] sm:$0xff] }
  0x21   :  { %v163_v43 = vsel %vm111_vm0, %v32_v41, 0.0  ;;  %v76_v48 = vld [vmem:[%s2040_s0 + $0x1e8] sm:$0xff]  ;;  %v21_v53 = vld [vmem:[%s2040_s0 + $0x30] sm:$0xff]  ;;  %v166_v54 = vsel %vm111_vm0, %v33_v52, 0.0  ;;  %v232_v58 = vsel %vm111_vm0, %v55_v56, 0.0  ;;  %v66_v61 = vld [vmem:[%s2040_s0 + $0x198] sm:$0xff] }
  0x22   :  { %v295_v50 = vsel %vm111_vm0, %v76_v48, 0.0  ;;  %v130_v55 = vsel %vm111_vm0, %v21_v53, 0.0  ;;  %v44_v57 = vld [vmem:[%s2040_s0 + $0xe8] sm:$0xff]  ;;  %v77_v60 = vld [vmem:[%s2040_s0 + $0x1f0] sm:$0xff]  ;;  %v265_v63 = vsel %vm111_vm0, %v66_v61, 0.0  ;;  %v87_v1 = vld [vmem:[%s2040_s0 + $0x240] sm:$0xff] }
  0x23   :  { %257 = vadd.xlane.f32.xlu1 %v256_v34  ;;  %v199_v59 = vsel %vm111_vm0, %v44_v57, 0.0  ;;  %v298_v62 = vsel %vm111_vm0, %v77_v60, 0.0  ;;  %v88_v0 = vld [vmem:[%s2040_s0 + $0x248] sm:$0xff]  ;;  %v328_v3 = vsel %vm111_vm0, %v87_v1, 0.0  ;;  %v34_v4 = vld [vmem:[%s2040_s0 + $0x98] sm:$0xff]  ;;  %v45_v9 = vld [vmem:[%s2040_s0 + $0xf0] sm:$0xff] }
  0x24   :  { %227 = vadd.xlane.f32.xlu0 %v226_v35  ;;  %v331_v2 = vsel %vm111_vm0, %v88_v0, 0.0  ;;  %v22_v5 = vld [vmem:[%s2040_s0 + $0x38] sm:$0xff]  ;;  %v169_v6 = vsel %vm111_vm0, %v34_v4, 0.0  ;;  %v56_v8 = vld [vmem:[%s2040_s0 + $0x148] sm:$0xff]  ;;  %v202_v11 = vsel %vm111_vm0, %v45_v9, 0.0  ;;  %v67_v13 = vld [vmem:[%s2040_s0 + $0x1a0] sm:$0xff] }
  0x25   :  { %v133_v7 = vsel %vm111_vm0, %v22_v5, 0.0  ;;  %v235_v10 = vsel %vm111_vm0, %v56_v8, 0.0  ;;  %v78_v12 = vld [vmem:[%s2040_s0 + $0x1f8] sm:$0xff]  ;;  %v268_v15 = vsel %vm111_vm0, %v67_v13, 0.0  ;;  %v99_v16 = vld [vmem:[%s2040_s0 + $0x2a0] sm:$0xff]  ;;  %v89_v17 = vld [vmem:[%s2040_s0 + $0x250] sm:$0xff] }
  0x26   :  { %v301_v14 = vsel %vm111_vm0, %v78_v12, 0.0  ;;  %v364_v18 = vsel %vm111_vm0, %v99_v16, 0.0  ;;  %v334_v19 = vsel %vm111_vm0, %v89_v17, 0.0  ;;  %v23_v20 = vld [vmem:[%s2040_s0 + $0x40] sm:$0xff]  ;;  %v100_v21 = vld [vmem:[%s2040_s0 + $0x2a8] sm:$0xff]  ;;  %v46_v24 = vld [vmem:[%s2040_s0 + $0xf8] sm:$0xff] }
  0x27   :  { %128 = vadd.xlane.f32.xlu1 %v127_v38  ;;  %v136_v22 = vsel %vm111_vm0, %v23_v20, 0.0  ;;  %v367_v23 = vsel %vm111_vm0, %v100_v21, 0.0  ;;  %v35_v25 = vld [vmem:[%s2040_s0 + $0xa0] sm:$0xff]  ;;  %v205_v26 = vsel %vm111_vm0, %v46_v24, 0.0  ;;  %v68_v28 = vld [vmem:[%s2040_s0 + $0x1a8] sm:$0xff]  ;;  %v57_v29 = vld [vmem:[%s2040_s0 + $0x150] sm:$0xff] }
  0x28   :  { %260 = vadd.xlane.f32.xlu0 %v259_v39  ;;  %v172_v27 = vsel %vm111_vm0, %v35_v25, 0.0  ;;  %v271_v30 = vsel %vm111_vm0, %v68_v28, 0.0  ;;  %v238_v31 = vsel %vm111_vm0, %v57_v29, 0.0  ;;  %v90_v32 = vld [vmem:[%s2040_s0 + $0x258] sm:$0xff]  ;;  %v79_v33 = vld [vmem:[%s2040_s0 + $0x200] sm:$0xff]  ;;  %v24_v36 = vld [vmem:[%s2040_s0 + $0x48] sm:$0xff] }
  0x29   :  { %v337_v34 = vsel %vm111_vm0, %v90_v32, 0.0  ;;  %v304_v35 = vsel %vm111_vm0, %v79_v33, 0.0  ;;  %v101_v37 = vld [vmem:[%s2040_s0 + $0x2b0] sm:$0xff]  ;;  %v139_v38 = vsel %vm111_vm0, %v24_v36, 0.0  ;;  %v47_v40 = vld [vmem:[%s2040_s0 + $0x100] sm:$0xff]  ;;  %v36_v41 = vld [vmem:[%s2040_s0 + $0xa8] sm:$0xff] }
  0x2a   :  { %v370_v39 = vsel %vm111_vm0, %v101_v37, 0.0  ;;  %v69_v44 = vld [vmem:[%s2040_s0 + $0x1b0] sm:$0xff]  ;;  %v58_v45 = vld [vmem:[%s2040_s0 + $0x158] sm:$0xff]  ;;  %v91_v48 = vld [vmem:[%s2040_s0 + $0x260] sm:$0xff]  ;;  %vm643_vm4 = vcmask 326912   ;;  %vm650_vm5 = vcmask 392512  }
  0x2b   :  { %197 = vadd.xlane.f32.xlu1 %v196_v42  ;;  %v208_v42 = vsel %vm111_vm0, %v47_v40, 0.0  ;;  %v80_v49 = vld [vmem:[%s2040_s0 + $0x208] sm:$0xff]  ;;  %v25_v52 = vld [vmem:[%s2040_s0 + $0x50] sm:$0xff]  ;;  %v102_v53 = vld [vmem:[%s2040_s0 + $0x2b8] sm:$0xff]  ;;  %vm657_vm6 = vcmask 458112   ;;  %vm1311_vm7 = vmmov 0  }
  0x2c   :  { %164 = vadd.xlane.f32.xlu0 %v163_v43  ;;  %v175_v43 = vsel %vm111_vm0, %v36_v41, 0.0  ;;  %v48_v56 = vld [vmem:[%s2040_s0 + $0x108] sm:$0xff]  ;;  %v37_v57 = vld [vmem:[%s2040_s0 + $0xb0] sm:$0xff]  ;;  %v70_v60 = vld [vmem:[%s2040_s0 + $0x1b8] sm:$0xff]  ;;  %vm664_vm8 = vcmask 523712   ;;  %vm671_vm9 = vcmask 589312  }
  0x2d   :  { %v59_v61 = vld [vmem:[%s2040_s0 + $0x160] sm:$0xff]  ;;  %v92_v0 = vld [vmem:[%s2040_s0 + $0x268] sm:$0xff]  ;;  %v81_v1 = vld [vmem:[%s2040_s0 + $0x210] sm:$0xff]  ;;  %vm678_vm10 = vcmask 654912   ;;  %vm685_vm11 = vcmask 720512   ;;  %vm692_vm12 = vcmask 786112  }
  0x2e   :  { %v26_v4 = vld [vmem:[%s2040_s0 + $0x58] sm:$0xff]  ;;  %v103_v5 = vld [vmem:[%s2040_s0 + $0x2c0] sm:$0xff]  ;;  %v49_v8 = vld [vmem:[%s2040_s0 + $0x110] sm:$0xff]  ;;  %vm1107_vm13 = vcmask 1041409   ;;  %vm1109_vm14 = vcmask 1042434   ;;  %vm1111_vm15 = vcmask 1043459  }
  0x2f   :  { %263 = vadd.xlane.f32.xlu1 %v262_v46  ;;  %v274_v46 = vsel %vm111_vm0, %v69_v44, 0.0  ;;  %v38_v9 = vld [vmem:[%s2040_s0 + $0xb8] sm:$0xff]  ;;  %v71_v12 = vld [vmem:[%s2040_s0 + $0x1c0] sm:$0xff]  ;;  %v60_v13 = vld [vmem:[%s2040_s0 + $0x168] sm:$0xff]  ;;  %s1313_s12 = smov [#allocation2]  }
  0x30   :  { %230 = vadd.xlane.f32.xlu0 %v229_v47  ;;  %v241_v47 = vsel %vm111_vm0, %v58_v45, 0.0  ;;  %v247_v16 = vsel %vm111_vm0, %v60_v13, 0.0  ;;  %v61_v40 = vld [vmem:[%s2040_s0 + $0x170] sm:$0xff]  ;;  %s1210_s13 = sshll.u32 %s1313_s12, 4  ;;  %s1211_s13 = int_to_ptr.vmem [resolvable:$true] %s1210_s13 }
  0x31   :  { %s1286_s14 = scalar_lea.vmem %s1211_s13, 128  ;;  %p1291_p1 = scmp.lt.s32.totalorder %s1211_s13, %s1211_s13 }
  0x32   :  { %p1287_p0 = scmp.ne.s32.totalorder %s1211_s13, %s1286_s14  ;;  %p1292_p2 = scmp.lt.s32.totalorder %s1286_s14, %s1286_s14 }
  0x33   :  { %296 = vadd.xlane.f32.xlu1 %v295_v50  ;;  %v340_v50 = vsel %vm111_vm0, %v91_v48, 0.0 }
  0x34   :  { %293 = vadd.xlane.f32.xlu0 %v292_v51  ;;  %v307_v51 = vsel %vm111_vm0, %v80_v49, 0.0  ;;  %v250_v49 = vsel %vm111_vm0, %v61_v40, 0.0  ;;  %p1293_p3 = por %p1292_p2, %p1291_p1 }
  0x36   :  { %p1294_p4 = pnand %p1293_p3, %p1287_p0 }
  0x37   :  { %167 = vadd.xlane.f32.xlu1 %v166_v54  ;;  %v142_v54 = vsel %vm111_vm0, %v25_v52, 0.0 }
  0x38   :  { %131 = vadd.xlane.f32.xlu0 %v130_v55  ;;  %v373_v55 = vsel %vm111_vm0, %v102_v53, 0.0 }
  0x3b   :  { %233 = vadd.xlane.f32.xlu1 %v232_v58  ;;  %v211_v58 = vsel %vm111_vm0, %v48_v56, 0.0 }
  0x3c   :  { %200 = vadd.xlane.f32.xlu0 %v199_v59  ;;  %v178_v59 = vsel %vm111_vm0, %v37_v57, 0.0 }
  0x3f   :  { %299 = vadd.xlane.f32.xlu1 %v298_v62  ;;  %v277_v62 = vsel %vm111_vm0, %v70_v60, 0.0 }
  0x40   :  { %266 = vadd.xlane.f32.xlu0 %v265_v63  ;;  %v244_v63 = vsel %vm111_vm0, %v59_v61, 0.0 }
  0x43   :  { %332 = vadd.xlane.f32.xlu1 %v331_v2  ;;  %v343_v2 = vsel %vm111_vm0, %v92_v0, 0.0 }
  0x44   :  { %329 = vadd.xlane.f32.xlu0 %v328_v3  ;;  %v310_v3 = vsel %vm111_vm0, %v81_v1, 0.0 }
  0x47   :  { %170 = vadd.xlane.f32.xlu1 %v169_v6  ;;  %v145_v6 = vsel %vm111_vm0, %v26_v4, 0.0  ;;  %v105_v4 = vld [vmem:[%s2040_s0 + $0x2d0] sm:$0xff] }
  0x48   :  { %134 = vadd.xlane.f32.xlu0 %v133_v7  ;;  %v376_v7 = vsel %vm111_vm0, %v103_v5, 0.0 }
  0x4b   :  { %236 = vadd.xlane.f32.xlu1 %v235_v10  ;;  %v214_v10 = vsel %vm111_vm0, %v49_v8, 0.0 }
  0x4c   :  { %203 = vadd.xlane.f32.xlu0 %v202_v11  ;;  %v181_v11 = vsel %vm111_vm0, %v38_v9, 0.0 }
  0x4f   :  { %302 = vadd.xlane.f32.xlu1 %v301_v14  ;;  %v611_v14 = vlaneseq }
  0x50   :  { %269 = vadd.xlane.f32.xlu0 %v268_v15  ;;  %v280_v15 = vsel %vm111_vm0, %v71_v12, 0.0 }
  0x51   :  { %v1622_v17 = vand.u32 127, %v611_v14  ;;  %v1630_v20 = vshrl.u32 %v611_v14, 7 }
  0x53   :  { %365 = vadd.xlane.f32.xlu1 %v364_v18  ;;  %v93_v18 = vld [vmem:[%s2040_s0 + $0x270] sm:$0xff]  ;;  %v617_v21 = vadd.s32 4294967288, %v1622_v17  ;;  %v1643_v28 = vsub.s32 %v1622_v17, %v1630_v20 }
  0x54   :  { %335 = vadd.xlane.f32.xlu0 %v334_v19  ;;  %v82_v19 = vld [vmem:[%s2040_s0 + $0x218] sm:$0xff]  ;;  %v346_v24 = vsel %vm111_vm0, %v93_v18, 0.0 }
  0x55   :  { %v313_v25 = vsel %vm111_vm0, %v82_v19, 0.0  ;;  %v1647_v32 = vsub.s32 %v617_v21, %v1630_v20  ;;  %v638_v21 = vadd.s32 4294967264, %v1622_v17 }
  0x57   :  { %137 = vadd.xlane.f32.xlu1 %v136_v22 }
  0x58   :  { %368 = vadd.xlane.f32.xlu0 %v367_v23 }
  0x5b   :  { %206 = vadd.xlane.f32.xlu1 %v205_v26  ;;  %v50_v26 = vld [vmem:[%s2040_s0 + $0x118] sm:$0xff] }
  0x5c   :  { %173 = vadd.xlane.f32.xlu0 %v172_v27  ;;  %v104_v27 = vld [vmem:[%s2040_s0 + $0x2c8] sm:$0xff] }
  0x5d   :  { %v379_v36 = vsel %vm111_vm0, %v104_v27, 0.0 }
  0x5f   :  { %272 = vadd.xlane.f32.xlu1 %v271_v30  ;;  %v624_v30 = vadd.s32 4294967280, %v1622_v17 }
  0x60   :  { %239 = vadd.xlane.f32.xlu0 %v238_v31 }
  0x63   :  { %338 = vadd.xlane.f32.xlu1 %v337_v34 }
  0x64   :  { %305 = vadd.xlane.f32.xlu0 %v304_v35  ;;  %v217_v35 = vsel %vm111_vm0, %v50_v26, 0.0 }
  0x67   :  { %140 = vadd.xlane.f32.xlu1 %v139_v38 }
  0x68   :  { %371 = vadd.xlane.f32.xlu0 %v370_v39  ;;  %v72_v39 = vld [vmem:[%s2040_s0 + $0x1c8] sm:$0xff] }
  0x69   :  { %v283_v48 = vsel %vm111_vm0, %v72_v39, 0.0 }
  0x6b   :  { %209 = vadd.xlane.f32.xlu1 %v208_v42  ;;  %v1659_v42 = vsub.s32 %v624_v30, %v1630_v20  ;;  %v106_v30 = vld [vmem:[%s2040_s0 + $0x2d8] sm:$0xff] }
  0x6c   :  { %176 = vadd.xlane.f32.xlu0 %v175_v43 }
  0x6f   :  { %275 = vadd.xlane.f32.xlu1 %v274_v46 }
  0x70   :  { %242 = vadd.xlane.f32.xlu0 %v241_v47 }
  0x73   :  { %341 = vadd.xlane.f32.xlu1 %v340_v50 }
  0x74   :  { %308 = vadd.xlane.f32.xlu0 %v307_v51 }
  0x77   :  { %143 = vadd.xlane.f32.xlu1 %v142_v54  ;;  %v94_v54 = vld [vmem:[%s2040_s0 + $0x278] sm:$0xff] }
  0x78   :  { %374 = vadd.xlane.f32.xlu0 %v373_v55  ;;  %v83_v55 = vld [vmem:[%s2040_s0 + $0x220] sm:$0xff]  ;;  %v349_v61 = vsel %vm111_vm0, %v94_v54, 0.0 }
  0x7b   :  { %212 = vadd.xlane.f32.xlu1 %v211_v58  ;;  %v631_v58 = vadd.s32 4294967272, %v1622_v17 }
  0x7c   :  { %179 = vadd.xlane.f32.xlu0 %v178_v59 }
  0x7f   :  { %278 = vadd.xlane.f32.xlu1 %v277_v62  ;;  %v316_v62 = vsel %vm111_vm0, %v83_v55, 0.0 }
  0x80   :  { %245 = vadd.xlane.f32.xlu0 %v244_v63 }
  0x83   :  { %344 = vadd.xlane.f32.xlu1 %v343_v2 }
  0x84   :  { %311 = vadd.xlane.f32.xlu0 %v310_v3  ;;  %v62_v3 = vld [vmem:[%s2040_s0 + $0x178] sm:$0xff] }
  0x87   :  { %146 = vadd.xlane.f32.xlu1 %v145_v6 }
  0x88   :  { %377 = vadd.xlane.f32.xlu0 %v376_v7  ;;  %v1690_v7 = vsub.s32 %v631_v58, %v1630_v20  ;;  %v96_v58 = vld [vmem:[%s2040_s0 + $0x288] sm:$0xff] }
  0x8b   :  { %215 = vadd.xlane.f32.xlu1 %v214_v10  ;;  %v253_v10 = vsel %vm111_vm0, %v62_v3, 0.0 }
  0x8c   :  { %182 = vadd.xlane.f32.xlu0 %v181_v11  ;;  %v382_v11 = vsel %vm111_vm0, %v105_v4, 0.0 }
  0x8f   :  { %281 = vadd.xlane.f32.xlu1 %v280_v15  ;;  %v84_v15 = vld [vmem:[%s2040_s0 + $0x228] sm:$0xff] }
  0x90   :  { %248 = vadd.xlane.f32.xlu0 %v247_v16  ;;  %v150_v22 = vpop.xlane.xlu1 %149  ;;  %v73_v16 = vld [vmem:[%s2040_s0 + $0x1d0] sm:$0xff] }
  0x91   :  { %v114_v23 = vpop.xlane.xlu0 %113  ;;  %v412_v29 = vmul.f32 0.015625, %v150_v22 }
  0x92   :  { %v400_v31 = vmul.f32 0.015625, %v114_v23 }
  0x93   :  { %347 = vadd.xlane.f32.xlu1 %v346_v24  ;;  %v697_v41 = vrot.slane %v412_v29, %v1643_v28  ;;  %v319_v24 = vsel %vm111_vm0, %v84_v15, 0.0 }
  0x94   :  { %314 = vadd.xlane.f32.xlu0 %v313_v25  ;;  %v153_v33 = vpop.xlane.xlu1 %152  ;;  %v616_v43 = vrot.slane %v400_v31, %v1643_v28  ;;  %v286_v25 = vsel %vm111_vm0, %v73_v16, 0.0  ;;  %v95_v31 = vld [vmem:[%s2040_s0 + $0x280] sm:$0xff] }
  0x95   :  { %v117_v34 = vpop.xlane.xlu0 %116  ;;  %v413_v37 = vmul.f32 0.015625, %v153_v33  ;;  %v352_v39 = vsel %vm111_vm0, %v95_v31, 0.0 }
  0x96   :  { %v401_v38 = vmul.f32 0.015625, %v117_v34 }
  0x97   :  { %v701_v44 = vrot.slane %v413_v37, %v1647_v32  ;;  %218 = vadd.xlane.f32.xlu1 %v217_v35  ;;  %v1716_v35 = vsub.s32 %v638_v21, %v1630_v20  ;;  %v108_v21 = vld [vmem:[%s2040_s0 + $0x2e8] sm:$0xff] }
  0x98   :  { %v621_v45 = vrot.slane %v401_v38, %v1647_v32  ;;  %380 = vadd.xlane.f32.xlu0 %v379_v36  ;;  %v156_v46 = vpop.xlane.xlu1 %155  ;;  %v385_v38 = vsel %vm111_vm0, %v106_v30, 0.0 }
  0x99   :  { %v120_v47 = vpop.xlane.xlu0 %119  ;;  %v702_v50 = vsel %vm622_vm1, %v701_v44, %v697_v41  ;;  %v414_v52 = vmul.f32 0.015625, %v156_v46  ;;  %v85_v44 = vld [vmem:[%s2040_s0 + $0x230] sm:$0xff] }
  0x9a   :  { %v623_v51 = vsel %vm622_vm1, %v621_v45, %v616_v43  ;;  %v402_v53 = vmul.f32 0.015625, %v120_v47  ;;  %v74_v45 = vld [vmem:[%s2040_s0 + $0x1d8] sm:$0xff] }
  0x9b   :  { %v706_v56 = vrot.slane %v414_v52, %v1659_v42  ;;  %284 = vadd.xlane.f32.xlu1 %v283_v48  ;;  %v289_v52 = vsel %vm111_vm0, %v74_v45, 0.0 }
  0x9c   :  { %v628_v57 = vrot.slane %v402_v53, %v1659_v42  ;;  %251 = vadd.xlane.f32.xlu0 %v250_v49  ;;  %v189_v59 = vpop.xlane.xlu1 %188 }
  0x9d   :  { %v186_v60 = vpop.xlane.xlu0 %185  ;;  %v707_v63 = vsel %vm629_vm2, %v706_v56, %v702_v50  ;;  %v425_v1 = vmul.f32 0.015625, %v189_v59 }
  0x9e   :  { %v630_v0 = vsel %vm629_vm2, %v628_v57, %v623_v51  ;;  %v424_v2 = vmul.f32 0.015625, %v186_v60  ;;  %v322_v51 = vsel %vm111_vm0, %v85_v44, 0.0  ;;  %v107_v57 = vld [vmem:[%s2040_s0 + $0x2e0] sm:$0xff] }
  0x9f   :  { %v760_v5 = vrot.slane %v425_v1, %v1647_v32  ;;  %350 = vadd.xlane.f32.xlu1 %v349_v61  ;;  %v645_v61 = vadd.s32 4294967256, %v1622_v17  ;;  %v355_v1 = vsel %vm111_vm0, %v96_v58, 0.0 }
  0xa0   :  { %v756_v6 = vrot.slane %v424_v2, %v1643_v28  ;;  %317 = vadd.xlane.f32.xlu0 %v316_v62  ;;  %v159_v8 = vpop.xlane.xlu1 %158 }
  0xa1   :  { %v123_v9 = vpop.xlane.xlu0 %122  ;;  %v415_v13 = vmul.f32 0.015625, %v159_v8 }
  0xa2   :  { %v761_v12 = vsel %vm622_vm1, %v760_v5, %v756_v6  ;;  %v403_v14 = vmul.f32 0.015625, %v123_v9  ;;  %v97_v5 = vld [vmem:[%s2040_s0 + $0x290] sm:$0xff]  ;;  %v86_v6 = vld [vmem:[%s2040_s0 + $0x238] sm:$0xff] }
  0xa3   :  { %v711_v18 = vrot.slane %v415_v13, %v1690_v7  ;;  %254 = vadd.xlane.f32.xlu1 %v253_v10  ;;  %v1755_v10 = vsub.s32 %v645_v61, %v1630_v20  ;;  %v358_v13 = vsel %vm111_vm0, %v97_v5, 0.0 }
  0xa4   :  { %v635_v19 = vrot.slane %v403_v14, %v1690_v7  ;;  %383 = vadd.xlane.f32.xlu0 %v382_v11  ;;  %v222_v22 = vpop.xlane.xlu1 %221  ;;  %v325_v14 = vsel %vm111_vm0, %v86_v6, 0.0 }
  0xa5   :  { %v192_v23 = vpop.xlane.xlu0 %191  ;;  %v712_v26 = vsel %vm636_vm3, %v711_v18, %v707_v63  ;;  %v436_v33 = vmul.f32 0.015625, %v222_v22 }
  0xa6   :  { %v637_v27 = vsel %vm636_vm3, %v635_v19, %v630_v0  ;;  %v426_v29 = vmul.f32 0.015625, %v192_v23  ;;  %v388_v0 = vsel %vm111_vm0, %v107_v57, 0.0  ;;  %v98_v19 = vld [vmem:[%s2040_s0 + $0x298] sm:$0xff]  ;;  %v652_v57 = vadd.s32 4294967248, %v1622_v17 }
  0xa7   :  { %320 = vadd.xlane.f32.xlu1 %v319_v24  ;;  %v815_v46 = vrot.slane %v436_v33, %v1643_v28 }
  0xa8   :  { %v765_v34 = vrot.slane %v426_v29, %v1659_v42  ;;  %287 = vadd.xlane.f32.xlu0 %v286_v25  ;;  %v126_v36 = vpop.xlane.xlu1 %125  ;;  %v391_v29 = vsel %vm111_vm0, %v108_v21, 0.0  ;;  %v1813_v5 = vsub.s32 %v652_v57, %v1630_v20  ;;  %v1312_v57 = vmov 0.0  }
  0xa9   :  { %v225_v37 = vpop.xlane.xlu0 %224  ;;  %v404_v41 = vmul.f32 0.015625, %v126_v36  ;;  %v109_v36 = vld [vmem:[%s2040_s0 + $0x2f0] sm:$0xff]  ;;  %1257 = vmatprep.mubr.msk.f32.mxu0 %vm1311_vm7, %v1312_v57 }
  0xaa   :  { %v766_v40 = vsel %vm629_vm2, %v765_v34, %v761_v12  ;;  %v437_v43 = vmul.f32 0.015625, %v225_v37  ;;  %v110_v37 = vld [vmem:[%s2040_s0 + $0x2f8] sm:$0xff] }
  0xab   :  { %v642_v47 = vrot.slane %v404_v41, %v1716_v35  ;;  %386 = vadd.xlane.f32.xlu1 %v385_v38  ;;  %v496_v38 = vld [vmem:[%s2041_s1] sm:$0xff] }
  0xac   :  { %v819_v48 = vrot.slane %v437_v43, %v1647_v32  ;;  %353 = vadd.xlane.f32.xlu0 %v352_v39  ;;  %v195_v49 = vpop.xlane.xlu1 %194  ;;  %v497_v39 = vld [vmem:[%s2041_s1 + $0x8] sm:$0xff] }
  0xad   :  { %v162_v50 = vpop.xlane.xlu0 %161  ;;  %v644_v53 = vsel %vm643_vm4, %v642_v47, %v637_v27  ;;  %v427_v55 = vmul.f32 0.015625, %v195_v49  ;;  %v361_v27 = vsel %vm111_vm0, %v98_v19, 0.0  ;;  %v1261_v43 = vpack.c.bf16 %v497_v39, %v496_v38 }
  0xae   :  { %v820_v54 = vsel %vm622_vm1, %v819_v48, %v815_v46  ;;  %v416_v56 = vmul.f32 0.015625, %v162_v50  ;;  %v394_v46 = vsel %vm111_vm0, %v109_v36, 0.0  ;;  %v397_v47 = vsel %vm111_vm0, %v110_v37, 0.0 }
  0xaf   :  { %v770_v59 = vrot.slane %v427_v55, %v1690_v7  ;;  %323 = vadd.xlane.f32.xlu1 %v322_v51  ;;  %v1310_v48 = vmov 0.0|0.0   ;;  %vm1113_vm0 = vcmask 1044484  }
  0xb0   :  { %v716_v60 = vrot.slane %v416_v56, %v1716_v35  ;;  %290 = vadd.xlane.f32.xlu0 %v289_v52  ;;  %v258_v62 = vpop.xlane.xlu1 %257  ;;  %1260 = vmatprep.subr.bf16.mxu0 %v1310_v48 }
  0xb1   :  { %v228_v63 = vpop.xlane.xlu0 %227  ;;  %v771_v2 = vsel %vm636_vm3, %v770_v59, %v766_v40  ;;  %v448_v8 = vmul.f32 0.015625, %v258_v62  ;;  %1262 = vmatpush3.bf16.msra.mxu0 %v1261_v43  ;;  %v507_v43 = vld [vmem:[%s2041_s1 + $0x58] sm:$0xff] }
  0xb2   :  { %v717_v3 = vsel %vm643_vm4, %v716_v60, %v712_v26  ;;  %v438_v4 = vmul.f32 0.015625, %v228_v63  ;;  %1263 = vmatprep.subr.bf16.mxu0 %v1310_v48 }
  0xb3   :  { %389 = vadd.xlane.f32.xlu1 %v388_v0  ;;  %v874_v22 = vrot.slane %v448_v8, %v1643_v28 }
  0xb4   :  { %v824_v9 = vrot.slane %v438_v4, %v1659_v42  ;;  %356 = vadd.xlane.f32.xlu0 %v355_v1  ;;  %v129_v11 = vpop.xlane.xlu1 %128  ;;  %v500_v1 = vld [vmem:[%s2041_s1 + $0x20] sm:$0xff] }
  0xb5   :  { %v261_v12 = vpop.xlane.xlu0 %260  ;;  %v405_v16 = vmul.f32 0.015625, %v129_v11 }
  0xb6   :  { %v825_v15 = vsel %vm629_vm2, %v824_v9, %v820_v54  ;;  %v449_v18 = vmul.f32 0.015625, %v261_v12  ;;  %v499_v54 = vld [vmem:[%s2041_s1 + $0x18] sm:$0xff] }
  0xb7   :  { %v649_v23 = vrot.slane %v405_v16, %v1755_v10  ;;  %359 = vadd.xlane.f32.xlu1 %v358_v13 }
  0xb8   :  { %v878_v24 = vrot.slane %v449_v18, %v1647_v32  ;;  %326 = vadd.xlane.f32.xlu0 %v325_v14  ;;  %v198_v25 = vpop.xlane.xlu1 %197  ;;  %v502_v14 = vld [vmem:[%s2041_s1 + $0x30] sm:$0xff] }
  0xb9   :  { %v165_v26 = vpop.xlane.xlu0 %164  ;;  %v1772_v30 = vsel %vm650_vm5, %v649_v23, %v644_v53  ;;  %v428_v33 = vmul.f32 0.015625, %v198_v25  ;;  %v498_v53 = vld [vmem:[%s2041_s1 + $0x10] sm:$0xff] }
  0xba   :  { %v879_v31 = vsel %vm622_vm1, %v878_v24, %v874_v22  ;;  %v417_v34 = vmul.f32 0.015625, %v165_v26  ;;  %v1264_v58 = vpack.c.bf16 %v499_v54, %v498_v53 }
  0xbb   :  { %v775_v40 = vrot.slane %v428_v33, %v1716_v35  ;;  %362 = vadd.xlane.f32.xlu1 %v361_v27  ;;  %v504_v27 = vld [vmem:[%s2041_s1 + $0x40] sm:$0xff] }
  0xbc   :  { %v721_v41 = vrot.slane %v417_v34, %v1755_v10  ;;  %392 = vadd.xlane.f32.xlu0 %v391_v29  ;;  %v264_v44 = vpop.xlane.xlu1 %263  ;;  %1265 = vmatpush3.bf16.msra.mxu0 %v1264_v58  ;;  %v505_v29 = vld [vmem:[%s2041_s1 + $0x48] sm:$0xff] }
  0xbd   :  { %v231_v45 = vpop.xlane.xlu0 %230  ;;  %v776_v49 = vsel %vm643_vm4, %v775_v40, %v771_v2  ;;  %v450_v51 = vmul.f32 0.015625, %v264_v44  ;;  %1266 = vmatprep.subr.bf16.mxu0 %v1310_v48  ;;  %v501_v2 = vld [vmem:[%s2041_s1 + $0x28] sm:$0xff]  ;;  %v1273_v34 = vpack.c.bf16 %v505_v29, %v504_v27 }
  0xbe   :  { %v722_v50 = vsel %vm650_vm5, %v721_v41, %v717_v3  ;;  %v439_v52 = vmul.f32 0.015625, %v231_v45  ;;  %v1267_v6 = vpack.c.bf16 %v501_v2, %v500_v1  ;;  %v506_v41 = vld [vmem:[%s2041_s1 + $0x50] sm:$0xff] }
  0xbf   :  { %v883_v55 = vrot.slane %v450_v51, %v1659_v42  ;;  %398 = vadd.xlane.f32.xlu1 %v397_v47  ;;  %v1276_v47 = vpack.c.bf16 %v507_v43, %v506_v41 }
  0xc0   :  { %v829_v56 = vrot.slane %v439_v52, %v1690_v7  ;;  %395 = vadd.xlane.f32.xlu0 %v394_v46  ;;  %v297_v59 = vpop.xlane.xlu1 %296  ;;  %1268 = vmatpush3.bf16.msra.mxu0 %v1267_v6  ;;  %v659_v46 = vadd.s32 4294967240, %v1622_v17 }
  0xc1   :  { %v294_v60 = vpop.xlane.xlu0 %293  ;;  %v884_v61 = vsel %vm629_vm2, %v883_v55, %v879_v31  ;;  %v461_v63 = vmul.f32 0.015625, %v297_v59  ;;  %1269 = vmatprep.subr.bf16.mxu0 %v1310_v48 }
  0xc2   :  { %v830_v62 = vsel %vm636_vm3, %v829_v56, %v825_v15  ;;  %v460_v0 = vmul.f32 0.015625, %v294_v60  ;;  %v503_v15 = vld [vmem:[%s2041_s1 + $0x38] sm:$0xff]  ;;  %v1851_v56 = vsub.s32 %v659_v46, %v1630_v20 }
  0xc3   :  { %v937_v3 = vrot.slane %v461_v63, %v1647_v32  ;;  %v1270_v19 = vpack.c.bf16 %v503_v15, %v502_v14 }
  0xc4   :  { %v933_v4 = vrot.slane %v460_v0, %v1643_v28  ;;  %v168_v8 = vpop.xlane.xlu1 %167 }
  0xc5   :  { %v132_v9 = vpop.xlane.xlu0 %131  ;;  %v418_v12 = vmul.f32 0.015625, %v168_v8  ;;  %1271 = vmatpush3.bf16.msra.mxu0 %v1270_v19 }
  0xc6   :  { %v938_v11 = vsel %vm622_vm1, %v937_v3, %v933_v4  ;;  %v406_v13 = vmul.f32 0.015625, %v132_v9  ;;  %1272 = vmatprep.subr.bf16.mxu0 %v1310_v48 }
  0xc7   :  { %v726_v16 = vrot.slane %v418_v12, %v1813_v5 }
  0xc8   :  { %v656_v18 = vrot.slane %v406_v13, %v1813_v5  ;;  %v234_v21 = vpop.xlane.xlu1 %233 }
  0xc9   :  { %v201_v22 = vpop.xlane.xlu0 %200  ;;  %v727_v23 = vsel %vm657_vm6, %v726_v16, %v722_v50  ;;  %v440_v25 = vmul.f32 0.015625, %v234_v21  ;;  %1274 = vmatpush3.bf16.msra.mxu0 %v1273_v34 }
  0xca   :  { %v658_v24 = vsel %vm657_vm6, %v656_v18, %v1772_v30  ;;  %v429_v26 = vmul.f32 0.015625, %v201_v22  ;;  %1275 = vmatprep.subr.bf16.mxu0 %v1310_v48  ;;  %v666_v22 = vadd.s32 4294967232, %v1622_v17 }
  0xcb   :  { %v834_v31 = vrot.slane %v440_v25, %v1716_v35 }
  0xcc   :  { %v780_v33 = vrot.slane %v429_v26, %v1755_v10  ;;  %v300_v36 = vpop.xlane.xlu1 %299 }
  0xcd   :  { %v267_v37 = vpop.xlane.xlu0 %266  ;;  %v835_v30 = vsel %vm643_vm4, %v834_v31, %v830_v62  ;;  %v462_v39 = vmul.f32 0.015625, %v300_v36  ;;  %1277 = vmatpush3.bf16.msra.mxu0 %v1276_v47 }
  0xce   :  { %v781_v38 = vsel %vm650_vm5, %v780_v33, %v776_v49  ;;  %v451_v40 = vmul.f32 0.015625, %v267_v37  ;;  %v1869_v33 = vsub.s32 %v666_v22, %v1630_v20 }
  0xcf   :  { %v942_v44 = vrot.slane %v462_v39, %v1659_v42 }
  0xd0   :  { %v888_v45 = vrot.slane %v451_v40, %v1690_v7  ;;  %v333_v49 = vpop.xlane.xlu1 %332 }
  0xd1   :  { %v330_v50 = vpop.xlane.xlu0 %329  ;;  %v943_v51 = vsel %vm629_vm2, %v942_v44, %v938_v11  ;;  %v473_v52 = vmul.f32 0.015625, %v333_v49 }
  0xd2   :  { %v889_v48 = vsel %vm636_vm3, %v888_v45, %v884_v61  ;;  %v472_v53 = vmul.f32 0.015625, %v330_v50 }
  0xd3   :  { %v996_v54 = vrot.slane %v473_v52, %v1647_v32 }
  0xd4   :  { %v992_v55 = vrot.slane %v472_v53, %v1643_v28  ;;  %v171_v58 = vpop.xlane.xlu1 %170 }
  0xd5   :  { %v135_v59 = vpop.xlane.xlu0 %134  ;;  %v419_v62 = vmul.f32 0.015625, %v171_v58  ;;  %v673_v58 = vadd.s32 4294967224, %v1622_v17 }
  0xd6   :  { %v997_v60 = vsel %vm622_vm1, %v996_v54, %v992_v55  ;;  %v407_v63 = vmul.f32 0.015625, %v135_v59 }
  0xd7   :  { %v731_v61 = vrot.slane %v419_v62, %v1851_v56 }
  0xd8   :  { %v663_v0 = vrot.slane %v407_v63, %v1851_v56  ;;  %v237_v1 = vpop.xlane.xlu1 %236 }
  0xd9   :  { %v204_v2 = vpop.xlane.xlu0 %203  ;;  %v732_v3 = vsel %vm664_vm8, %v731_v61, %v727_v23  ;;  %v441_v6 = vmul.f32 0.015625, %v237_v1 }
  0xda   :  { %v665_v4 = vsel %vm664_vm8, %v663_v0, %v658_v24  ;;  %v430_v8 = vmul.f32 0.015625, %v204_v2 }
  0xdb   :  { %v839_v9 = vrot.slane %v441_v6, %v1755_v10 }
  0xdc   :  { %v785_v11 = vrot.slane %v430_v8, %v1813_v5  ;;  %v303_v12 = vpop.xlane.xlu1 %302 }
  0xdd   :  { %v270_v13 = vpop.xlane.xlu0 %269  ;;  %v840_v14 = vsel %vm650_vm5, %v839_v9, %v835_v30  ;;  %v463_v16 = vmul.f32 0.015625, %v303_v12 }
  0xde   :  { %v786_v15 = vsel %vm657_vm6, %v785_v11, %v781_v38  ;;  %v452_v18 = vmul.f32 0.015625, %v270_v13 }
  0xdf   :  { %v947_v19 = vrot.slane %v463_v16, %v1690_v7 }
  0xe0   :  { %v893_v21 = vrot.slane %v452_v18, %v1716_v35  ;;  %v366_v23 = vpop.xlane.xlu1 %365 }
  0xe1   :  { %v336_v24 = vpop.xlane.xlu0 %335  ;;  %v948_v25 = vsel %vm636_vm3, %v947_v19, %v943_v51  ;;  %v484_v29 = vmul.f32 0.015625, %v366_v23 }
  0xe2   :  { %v894_v26 = vsel %vm643_vm4, %v893_v21, %v889_v48  ;;  %v474_v27 = vmul.f32 0.015625, %v336_v24 }
  0xe3   :  { %v1051_v39 = vrot.slane %v484_v29, %v1643_v28 }
  0xe4   :  { %v1001_v31 = vrot.slane %v474_v27, %v1659_v42  ;;  %v138_v34 = vpop.xlane.xlu1 %137 }
  0xe5   :  { %v369_v36 = vpop.xlane.xlu0 %368  ;;  %v408_v30 = vmul.f32 0.015625, %v138_v34 }
  0xe6   :  { %v1002_v37 = vsel %vm629_vm2, %v1001_v31, %v997_v60  ;;  %v485_v38 = vmul.f32 0.015625, %v369_v36 }
  0xe7   :  { %v670_v40 = vrot.slane %v408_v30, %v1869_v33 }
  0xe8   :  { %v1055_v41 = vrot.slane %v485_v38, %v1647_v32  ;;  %v207_v43 = vpop.xlane.xlu1 %206 }
  0xe9   :  { %v174_v44 = vpop.xlane.xlu0 %173  ;;  %v672_v45 = vsel %vm671_vm9, %v670_v40, %v665_v4  ;;  %v431_v47 = vmul.f32 0.015625, %v207_v43 }
  0xea   :  { %v1056_v46 = vsel %vm622_vm1, %v1055_v41, %v1051_v39  ;;  %v420_v49 = vmul.f32 0.015625, %v174_v44  ;;  %vm1115_vm1 = vcmask 1045509  }
  0xeb   :  { %v790_v50 = vrot.slane %v431_v47, %v1851_v56 }
  0xec   :  { %v736_v51 = vrot.slane %v420_v49, %v1869_v33  ;;  %v273_v48 = vpop.xlane.xlu1 %272 }
  0xed   :  { %v240_v52 = vpop.xlane.xlu0 %239  ;;  %v791_v28 = vsel %vm664_vm8, %v790_v50, %v786_v15  ;;  %v453_v54 = vmul.f32 0.015625, %v273_v48 }
  0xee   :  { %v737_v53 = vsel %vm671_vm9, %v736_v51, %v732_v3  ;;  %v442_v32 = vmul.f32 0.015625, %v240_v52  ;;  %v1889_v3 = vsub.s32 %v673_v58, %v1630_v20 }
  0xef   :  { %v898_v55 = vrot.slane %v453_v54, %v1755_v10 }
  0xf0   :  { %v844_v57 = vrot.slane %v442_v32, %v1813_v5  ;;  %v339_v59 = vpop.xlane.xlu1 %338 }
  0xf1   :  { %v306_v60 = vpop.xlane.xlu0 %305  ;;  %v899_v62 = vsel %vm650_vm5, %v898_v55, %v894_v26  ;;  %v475_v61 = vmul.f32 0.015625, %v339_v59 }
  0xf2   :  { %v845_v63 = vsel %vm657_vm6, %v844_v57, %v840_v14  ;;  %v464_v0 = vmul.f32 0.015625, %v306_v60 }
  0xf3   :  { %v1006_v1 = vrot.slane %v475_v61, %v1690_v7 }
  0xf4   :  { %v952_v2 = vrot.slane %v464_v0, %v1716_v35  ;;  %v141_v4 = vpop.xlane.xlu1 %140 }
  0xf5   :  { %v372_v6 = vpop.xlane.xlu0 %371  ;;  %v1007_v8 = vsel %vm636_vm3, %v1006_v1, %v1002_v37  ;;  %v409_v11 = vmul.f32 0.015625, %v141_v4  ;;  %v680_v37 = vadd.s32 4294967216, %v1622_v17 }
  0xf6   :  { %v953_v9 = vsel %vm643_vm4, %v952_v2, %v948_v25  ;;  %v486_v12 = vmul.f32 0.015625, %v372_v6 }
  0xf7   :  { %v677_v13 = vrot.slane %v409_v11, %v1889_v3 }
  0xf8   :  { %v1060_v14 = vrot.slane %v486_v12, %v1659_v42  ;;  %v210_v15 = vpop.xlane.xlu1 %209 }
  0xf9   :  { %v177_v16 = vpop.xlane.xlu0 %176  ;;  %v679_v18 = vsel %vm678_vm10, %v677_v13, %v672_v45  ;;  %v432_v21 = vmul.f32 0.015625, %v210_v15 }
  0xfa   :  { %v1061_v19 = vsel %vm629_vm2, %v1060_v14, %v1056_v46  ;;  %v421_v22 = vmul.f32 0.015625, %v177_v16  ;;  %v1915_v46 = vsub.s32 %v680_v37, %v1630_v20  ;;  %vm1117_vm2 = vcmask 1046534  }
  0xfb   :  { %v795_v23 = vrot.slane %v432_v21, %v1869_v33 }
  0xfc   :  { %v741_v24 = vrot.slane %v421_v22, %v1889_v3  ;;  %v276_v25 = vpop.xlane.xlu1 %275 }
  0xfd   :  { %v243_v26 = vpop.xlane.xlu0 %242  ;;  %v1900_v27 = vsel %vm671_vm9, %v795_v23, %v791_v28  ;;  %v454_v42 = vmul.f32 0.015625, %v276_v25 }
  0xfe   :  { %v742_v29 = vsel %vm678_vm10, %v741_v24, %v737_v53  ;;  %v443_v31 = vmul.f32 0.015625, %v243_v26 }
  0xff   :  { %v903_v34 = vrot.slane %v454_v42, %v1813_v5 }
 0x100   :  { %v849_v36 = vrot.slane %v443_v31, %v1851_v56  ;;  %v342_v30 = vpop.xlane.xlu1 %341 }
 0x101   :  { %v309_v38 = vpop.xlane.xlu0 %308  ;;  %v1907_v39 = vsel %vm657_vm6, %v903_v34, %v899_v62  ;;  %v476_v41 = vmul.f32 0.015625, %v342_v30 }
 0x102   :  { %v1910_v40 = vsel %vm664_vm8, %v849_v36, %v845_v63  ;;  %v465_v43 = vmul.f32 0.015625, %v309_v38  ;;  %v687_v63 = vadd.s32 4294967208, %v1622_v17 }
 0x103   :  { %v1011_v44 = vrot.slane %v476_v41, %v1716_v35 }
 0x104   :  { %v957_v45 = vrot.slane %v465_v43, %v1755_v10  ;;  %v144_v47 = vpop.xlane.xlu1 %143 }
 0x105   :  { %v375_v49 = vpop.xlane.xlu0 %374  ;;  %v1918_v50 = vsel %vm643_vm4, %v1011_v44, %v1007_v8  ;;  %v410_v48 = vmul.f32 0.015625, %v144_v47 }
 0x106   :  { %v1921_v51 = vsel %vm650_vm5, %v957_v45, %v953_v9  ;;  %v487_v52 = vmul.f32 0.015625, %v375_v49 }
 0x107   :  { %v684_v28 = vrot.slane %v410_v48, %v1915_v46 }
 0x108   :  { %v1065_v53 = vrot.slane %v487_v52, %v1690_v7  ;;  %v213_v54 = vpop.xlane.xlu1 %212  ;;  %v1937_v7 = vsub.s32 %v687_v63, %v1630_v20 }
 0x109   :  { %v180_v32 = vpop.xlane.xlu0 %179  ;;  %v686_v55 = vsel %vm685_vm11, %v684_v28, %v679_v18  ;;  %v433_v18 = vmul.f32 0.015625, %v213_v54 }
 0x10a   :  { %v1927_v57 = vsel %vm636_vm3, %v1065_v53, %v1061_v19  ;;  %v422_v61 = vmul.f32 0.015625, %v180_v32  ;;  %vm1119_vm3 = vcmask 1047559  }
 0x10b   :  { %v800_v23 = vrot.slane %v433_v18, %v1889_v3 }
 0x10c   :  { %v279_v58 = vpop.xlane.xlu1 %278  ;;  %v746_v4 = vrot.slane %v422_v61, %v1915_v46 }
 0x10d   :  { %v246_v59 = vpop.xlane.xlu0 %245 }
 0x10e   :  { %v747_v17 = vsel %vm685_vm11, %v746_v4, %v742_v29  ;;  %v801_v29 = vsel %vm678_vm10, %v800_v23, %v1900_v27  ;;  %v444_v38 = vmul.f32 0.015625, %v246_v59 }
 0x110   :  { %v1929_v60 = vpop.xlane.xlu1 %344  ;;  %v854_v49 = vrot.slane %v444_v38, %v1869_v33 }
 0x111   :  { %v1931_v62 = vpop.xlane.xlu0 %311 }
 0x112   :  { %v855_v54 = vsel %vm671_vm9, %v854_v49, %v1910_v40 }
 0x114   :  { %v147_v0 = vpop.xlane.xlu1 %146 }
 0x115   :  { %v1934_v1 = vpop.xlane.xlu0 %377  ;;  %v411_v2 = vmul.f32 0.015625, %v147_v0  ;;  %v455_v0 = vmul.f32 0.015625, %v279_v58 }
 0x117   :  { %v691_v9 = vrot.slane %v411_v2, %v1937_v7  ;;  %v908_v40 = vrot.slane %v455_v0, %v1851_v56 }
 0x118   :  { %v216_v6 = vpop.xlane.xlu1 %215 }
 0x119   :  { %v183_v8 = vpop.xlane.xlu0 %182  ;;  %v693_v15 = vsel %vm692_vm12, %v691_v9, %v686_v55  ;;  %v434_v19 = vmul.f32 0.015625, %v216_v6 }
 0x11a   :  { %v423_v11 = vmul.f32 0.015625, %v183_v8 }
 0x11b   :  { %v805_v24 = vrot.slane %v434_v19, %v1915_v46 }
 0x11c   :  { %v751_v12 = vrot.slane %v423_v11, %v1937_v7  ;;  %v282_v13 = vpop.xlane.xlu1 %281 }
 0x11d   :  { %v249_v14 = vpop.xlane.xlu0 %248  ;;  %v806_v34 = vsel %vm685_vm11, %v805_v24, %v801_v29  ;;  %v456_v4 = vmul.f32 0.015625, %v282_v13  ;;  %v909_v13 = vsel %vm664_vm8, %v908_v40, %v1907_v39 }
 0x11e   :  { %v752_v20 = vsel %vm692_vm12, %v751_v12, %v747_v17  ;;  %v445_v43 = vmul.f32 0.015625, %v249_v14  ;;  %v477_v17 = vmul.f32 0.015625, %v1929_v60 }
 0x11f   :  { %v1108_v16 = vsel %vm1107_vm13, %v752_v20, %v693_v15  ;;  %v913_v14 = vrot.slane %v456_v4, %v1869_v33  ;;  %v466_v15 = vmul.f32 0.015625, %v1931_v62 }
 0x120   :  { %v348_v21 = vpop.xlane.xlu1 %347  ;;  %v859_v48 = vrot.slane %v445_v43, %v1889_v3  ;;  %v1016_v24 = vrot.slane %v477_v17, %v1755_v10 }
 0x121   :  { %v315_v22 = vpop.xlane.xlu0 %314  ;;  %v914_v60 = vsel %vm671_vm9, %v913_v14, %v909_v13  ;;  %v962_v62 = vrot.slane %v466_v15, %v1813_v5 }
 0x122   :  { %v860_v32 = vsel %vm678_vm10, %v859_v48, %v855_v54  ;;  %v467_v19 = vmul.f32 0.015625, %v315_v22 }
 0x124   :  { %v219_v25 = vpop.xlane.xlu1 %218 }
 0x125   :  { %v1947_v26 = vpop.xlane.xlu0 %380  ;;  %v435_v42 = vmul.f32 0.015625, %v219_v25  ;;  %v478_v25 = vmul.f32 0.015625, %v348_v21 }
 0x127   :  { %v810_v31 = vrot.slane %v435_v42, %v1937_v7  ;;  %v1021_v43 = vrot.slane %v478_v25, %v1813_v5 }
 0x128   :  { %v285_v36 = vpop.xlane.xlu1 %284 }
 0x129   :  { %v252_v37 = vpop.xlane.xlu0 %251  ;;  %v811_v30 = vsel %vm692_vm12, %v810_v31, %v806_v34  ;;  %v457_v8 = vmul.f32 0.015625, %v285_v36  ;;  %v488_v36 = vmul.f32 0.015625, %v1934_v1  ;;  %v1017_v1 = vsel %vm650_vm5, %v1016_v24, %v1918_v50 }
 0x12a   :  { %v1110_v41 = vsel %vm1109_vm14, %v811_v30, %v1108_v16  ;;  %v446_v44 = vmul.f32 0.015625, %v252_v37 }
 0x12b   :  { %v918_v20 = vrot.slane %v457_v8, %v1889_v3 }
 0x12c   :  { %v351_v45 = vpop.xlane.xlu1 %350  ;;  %v864_v27 = vrot.slane %v446_v44, %v1915_v46 }
 0x12d   :  { %v318_v47 = vpop.xlane.xlu0 %317  ;;  %v919_v29 = vsel %vm678_vm10, %v918_v20, %v914_v60  ;;  %v479_v37 = vmul.f32 0.015625, %v351_v45  ;;  %v963_v45 = vsel %vm657_vm6, %v962_v62, %v1921_v51  ;;  %v1022_v51 = vsel %vm657_vm6, %v1021_v43, %v1017_v1 }
 0x12e   :  { %v865_v59 = vsel %vm685_vm11, %v864_v27, %v860_v32  ;;  %v468_v42 = vmul.f32 0.015625, %v318_v47 }
 0x12f   :  { %v1026_v54 = vrot.slane %v479_v37, %v1851_v56 }
 0x130   :  { %v255_v52 = vpop.xlane.xlu1 %254  ;;  %v972_v44 = vrot.slane %v468_v42, %v1869_v33 }
 0x131   :  { %v384_v28 = vpop.xlane.xlu0 %383  ;;  %v447_v53 = vmul.f32 0.015625, %v255_v52  ;;  %v1070_v52 = vrot.slane %v488_v36, %v1716_v35 }
 0x133   :  { %v869_v55 = vrot.slane %v447_v53, %v1937_v7  ;;  %v489_v53 = vmul.f32 0.015625, %v1947_v26 }
 0x134   :  { %v321_v63 = vpop.xlane.xlu1 %320 }
 0x135   :  { %v288_v61 = vpop.xlane.xlu0 %287  ;;  %v870_v2 = vsel %vm692_vm12, %v869_v55, %v865_v59  ;;  %v469_v31 = vmul.f32 0.015625, %v321_v63 }
 0x136   :  { %v1112_v6 = vsel %vm1111_vm15, %v870_v2, %v1110_v41  ;;  %v458_v9 = vmul.f32 0.015625, %v288_v61  ;;  %v967_v41 = vrot.slane %v467_v19, %v1851_v56  ;;  %v490_v61 = vmul.f32 0.015625, %v384_v28 }
 0x137   :  { %v977_v48 = vrot.slane %v469_v31, %v1889_v3  ;;  %v1027_v28 = vsel %vm664_vm8, %v1026_v54, %v1022_v51  ;;  %v1071_v19 = vsel %vm643_vm4, %v1070_v52, %v1927_v57  ;;  %vm1121_vm4 = vcmask 785408  }
 0x138   :  { %v387_v11 = vpop.xlane.xlu1 %386  ;;  %v923_v58 = vrot.slane %v458_v9, %v1915_v46  ;;  %v968_v63 = vsel %vm664_vm8, %v967_v41, %v963_v45 }
 0x139   :  { %v354_v12 = vpop.xlane.xlu0 %353  ;;  %v973_v2 = vsel %vm671_vm9, %v972_v44, %v968_v63  ;;  %v491_v4 = vmul.f32 0.015625, %v387_v11  ;;  %v1080_v11 = vrot.slane %v490_v61, %v1813_v5 }
 0x13a   :  { %v924_v39 = vsel %vm685_vm11, %v923_v58, %v919_v29  ;;  %v480_v47 = vmul.f32 0.015625, %v354_v12  ;;  %v978_v26 = vsel %vm678_vm10, %v977_v48, %v973_v2  ;;  %v1075_v12 = vrot.slane %v489_v53, %v1755_v10 }
 0x13c   :  { %v324_v16 = vpop.xlane.xlu1 %323  ;;  %v1031_v35 = vrot.slane %v480_v47, %v1869_v33  ;;  %v1076_v60 = vsel %vm650_vm5, %v1075_v12, %v1071_v19 }
 0x13d   :  { %v291_v18 = vpop.xlane.xlu0 %290  ;;  %v470_v22 = vmul.f32 0.015625, %v324_v16  ;;  %v1081_v29 = vsel %vm657_vm6, %v1080_v11, %v1076_v60 }
 0x13e   :  { %v459_v23 = vmul.f32 0.015625, %v291_v18  ;;  %v1085_v18 = vrot.slane %v491_v4, %v1851_v56  ;;  %v1032_v13 = vsel %vm671_vm9, %v1031_v35, %v1027_v28 }
 0x13f   :  { %v982_v32 = vrot.slane %v470_v22, %v1915_v46 }
 0x140   :  { %v928_v34 = vrot.slane %v459_v23, %v1937_v7  ;;  %v390_v30 = vpop.xlane.xlu1 %389 }
 0x141   :  { %v357_v38 = vpop.xlane.xlu0 %356  ;;  %v983_v40 = vsel %vm685_vm11, %v982_v32, %v978_v26 }
 0x142   :  { %v929_v21 = vsel %vm692_vm12, %v928_v34, %v924_v39  ;;  %v481_v27 = vmul.f32 0.015625, %v357_v38 }
 0x143   :  { %v1114_v49 = vsel %vm1113_vm0, %v929_v21, %v1112_v6  ;;  %v492_v6 = vmul.f32 0.015625, %v390_v30  ;;  %v1218_v21 = vld [vmem:[%s2042_s2] ss:$0 sm:$0xff] }
 0x144   :  { %v360_v55 = vpop.xlane.xlu1 %359  ;;  %v1036_v8 = vrot.slane %v481_v27, %v1889_v3 }
 0x145   :  { %v327_v59 = vpop.xlane.xlu0 %326  ;;  %v482_v50 = vmul.f32 0.015625, %v360_v55  ;;  %v1090_v23 = vrot.slane %v492_v6, %v1869_v33  ;;  %v1086_v33 = vsel %vm664_vm8, %v1085_v18, %v1081_v29 }
 0x146   :  { %v471_v0 = vmul.f32 0.015625, %v327_v59  ;;  %v1037_v24 = vsel %vm678_vm10, %v1036_v8, %v1032_v13 }
 0x147   :  { %v1041_v17 = vrot.slane %v482_v50, %v1915_v46  ;;  %v1091_v37 = vsel %vm671_vm9, %v1090_v23, %v1086_v33 }
 0x148   :  { %v987_v9 = vrot.slane %v471_v0, %v1937_v7  ;;  %v363_v14 = vpop.xlane.xlu1 %362 }
 0x149   :  { %v393_v15 = vpop.xlane.xlu0 %392  ;;  %v483_v58 = vmul.f32 0.015625, %v363_v14  ;;  %v1042_v25 = vsel %vm685_vm11, %v1041_v17, %v1037_v24 }
 0x14a   :  { %v988_v20 = vsel %vm692_vm12, %v987_v9, %v983_v40  ;;  %v493_v16 = vmul.f32 0.015625, %v393_v15 }
 0x14b   :  { %v1116_v10 = vsel %vm1115_vm1, %v988_v20, %v1114_v49  ;;  %v1046_v5 = vrot.slane %v483_v58, %v1937_v7 }
 0x14c   :  { %v1095_v56 = vrot.slane %v493_v16, %v1889_v3  ;;  %v399_v62 = vpop.xlane.xlu1 %398 }
 0x14d   :  { %v396_v42 = vpop.xlane.xlu0 %395  ;;  %v1047_v31 = vsel %vm692_vm12, %v1046_v5, %v1042_v25  ;;  %v495_v57 = vmul.f32 0.015625, %v399_v62 }
 0x14e   :  { %v494_v34 = vmul.f32 0.015625, %v396_v42  ;;  %v1118_v36 = vsel %vm1117_vm2, %v1047_v31, %v1116_v10  ;;  %v1096_v30 = vsel %vm678_vm10, %v1095_v56, %v1091_v37 }
 0x14f   :  { %v1105_v22 = vrot.slane %v495_v57, %v1937_v7 }
 0x150   :  { %v1100_v39 = vrot.slane %v494_v34, %v1915_v46 }
 0x152   :  { %v1101_v3 = vsel %vm685_vm11, %v1100_v39, %v1096_v30 }
 0x153   :  { %v1106_v38 = vsel %vm692_vm12, %v1105_v22, %v1101_v3 }
 0x154   :  { %v1120_v41 = vsel %vm1119_vm3, %v1106_v38, %v1118_v36 }
 0x155   :  { %1258 = vmatmul.mubr.msk.f32.vlgmr.msra.gmra.mrb[0].mxu0 %vm1121_vm4, %v1120_v41 }
 0x228   :  { %v1190_v43 = vpop.f32.mrb[0].mxu0 }
 0x229   :  { %v1191_v44 = vadd.f32 %v1218_v21, %v1190_v43  ;;  %v1259_v47 = vpop.f32.mrb[1].mxu0 }
 0x22b   :  { %1194 = vmax.xlane.f32.xlu0 %v1191_v44 }
 0x2b8   :  { %v1195_v46 = vpop.xlane.xlu0 %1194 }
 0x2b9   :  { %v1196_v7 = vsub.f32 %v1191_v44, %v1195_v46 }
 0x2bb   :  { %v1197_v49 = vmul.f32 1.442695, %v1196_v7 }
 0x2bd   :  { %1282 = vpow2.f32 %v1197_v49 }
 0x2c7   :  { %v1283_v1 = vpop.eup %1282 }
 0x2c8   :  { %1199 = vadd.xlane.f32.xlu1 %v1283_v1 }
 0x355   :  { %v1200_v45 = vpop.xlane.xlu1 %1199 }
 0x356   :  { %1284 = vrcp.f32 %v1200_v45 }
 0x360   :  { %v1285_v48 = vpop.eup %1284 }
 0x361   :  { %v1202_v27 = vmul.f32 %v1285_v48, %v1283_v1 }
 0x363   :  { %1203 = vst [vmem:[#allocation2] sm:$0xff] %v1202_v27 }
 0x364   :  { %1297 = shalt.err (!%p1294_p4)
}
 0x365   :  { %s1298_s16 = scalar_lea.hbm %s2043_s3, 128 }
 0x366   :  { %p1299_p5 = scmp.ne.s32.totalorder %s2043_s3, %s1298_s16  ;;  %p1302_p6 = scmp.lt.u32.totalorder %s1298_s16, %s2043_s3 }
 0x368   :  { %p1304_p7 = pnand %p1302_p6, %p1299_p5 }
 0x36a   :  { %1307 = shalt.err (!%p1304_p7)
}
 0x36b   :  { %1213 = dma.vmem_to_hbm [thread:$0]  %s1211_s13, 128, %s2043_s3, [#allocation3]  }
 0x36c   :  { %1308 = dma.done.wait [#allocation3], 128  }
 0x36d   :  { %1309 = vsyncadd [#allocation3], 4294967168 }
 0x36e   :  { %1217 = vsyncpa [#allocation3], 1 }

</bundles_post_ra>
